<compile_context>
chip_gen: v7x
topology: tpu7x:2x2x1
jax: 0.10.0
libtpu: 0.0.40
codegen_flags: <defaults>
</compile_context>

<pallas_src>
import functools

import jax
import jax.numpy as jnp
from jax import lax
from jax.experimental import pallas as pl
from jax.experimental.pallas import tpu as pltpu


def _round_up(n: int, m: int) -> int:
    return ((n + m - 1) // m) * m


def _cdiv(a: int, b: int) -> int:
    return -(-a // b)


def _device_config():
    """Per-TPU-generation tile targets and VMEM budget (bytes) for this kernel."""
    try:
        kind = jax.devices()[0].device_kind.lower()
    except Exception:
        kind = ""
    if "v7" in kind or "7x" in kind:
        # 64 MiB physical VMEM / TensorCore: keep headroom, engage both TCs.
        return dict(tm=256, tn=256, budget=36 << 20, vmem_cap=48 << 20, two_core=True)
    if "v6" in kind:
        # 128 MiB VMEM: big row tiles cut x1 re-streaming from HBM.
        return dict(tm=512, tn=256, budget=88 << 20, vmem_cap=100 << 20, two_core=False)
    if "v5" in kind:
        # Lowest HBM BW: large tm (less x1 traffic) and tn=256 (fewer grid steps).
        return dict(tm=512, tn=256, budget=88 << 20, vmem_cap=100 << 20, two_core=False)
    # Unknown generation: conservative.
    return dict(tm=256, tn=256, budget=36 << 20, vmem_cap=48 << 20, two_core=False)


def _choose_tiles(B, S1, S2, D, in_bytes, out_bytes, pack, cfg, tm, tn, tk):
    """Pick (tm, tn, tk, nk) and return them together with the VMEM bytes needed."""

    def need(tm_, tn_, tk_, nk_):
        n = 2 * (tm_ + tn_) * tk_ * in_bytes          # double-buffered x2 / x1 tiles
        n += 2 * tm_ * tn_ * out_bytes                # double-buffered output tile
        n += 2 * (tm_ + tn_) * 4                      # double-buffered inv-norm tiles
        if nk_ > 1:
            n += tm_ * tn_ * 4                        # f32 accumulator scratch
        return n

    budget = cfg["budget"]
    # Column (x1 / lane) tile: full dim when small, else a multiple of 128.
    if tn is None:
        tn = S1 if S1 <= cfg["tn"] else cfg["tn"]
    # Row (x2 / sublane) tile: full dim when small, else sublane-pack aligned.
    if tm is None:
        tm = S2 if S2 <= cfg["tm"] else cfg["tm"]
        # v7x has two TensorCores: make sure there are >= 2 parallel tiles.
        if cfg["two_core"] and B * _cdiv(S2, tm) * _cdiv(S1, tn) < 2 and S2 >= 2 * pack:
            tm = _round_up(_cdiv(S2, 2), pack)

    # Feature (contraction) tile.
    if tk is not None and tk < D:
        tk = max(128, (tk // 128) * 128)
        nk = _cdiv(D, tk)
    else:
        tk, nk = D, 1
        # Shrink tm first (keeps output lane-dense and the x1 streaming width).
        tm_floor = max(pack, min(tm, 128))
        while need(tm, tn, tk, nk) > budget and tm > tm_floor:
            tm = max(tm_floor, _round_up(tm // 2, pack))
        if need(tm, tn, tk, nk) > budget and D > 128:
            # K-tile the feature dim so double-buffered operand tiles fit VMEM.
            fixed = 2 * tm * tn * out_bytes + 2 * (tm + tn) * 4 + tm * tn * 4
            per_k = 2 * (tm + tn) * in_bytes
            avail = max(0, budget - fixed)
            tk = (avail // per_k) // 128 * 128
            tk = max(128, min(tk, (D // 128) * 128))
            nk = _cdiv(D, tk)
            if nk <= 1:
                tk, nk = D, 1
        # Last resort: shrink tm toward the sublane pack.
        while need(tm, tn, tk, nk) > budget and tm > pack:
            new_tm = max(pack, _round_up(tm // 2, pack))
            if new_tm == tm:
                break
            tm = new_tm

    return tm, tn, tk, nk, need(tm, tn, tk, nk)


# ------------------------------ kernels ------------------------------------ #

def _cos_kernel(x2_ref, x1_ref, r2_ref, r1_ref, o_ref, *, precision):
    """x2_ref: (1,TM,D) rows, x1_ref: (1,TN,D) cols, r2: (1,TM,1), r1: (1,1,TN)."""
    g = lax.dot_general(x2_ref[0], x1_ref[0], (((1,), (1,)), ((), ())),
                        precision=precision,
                        preferred_element_type=jnp.float32)        # (TM, TN) on the MXU
    # Epilogue: two broadcast multiplies (all norms precomputed in the wrapper).
    o_ref[0] = (g * r2_ref[0] * r1_ref[0]).astype(o_ref.dtype)


def _cos_kernel_ktiled(x2_ref, x1_ref, r2_ref, r1_ref, o_ref, acc_ref, *,
                       precision, nk):
    """Same, but the feature dim is tiled over the innermost ('arbitrary') axis."""
    k = pl.program_id(3)

    @pl.when(k == 0)
    def _():
        acc_ref[...] = jnp.zeros_like(acc_ref)

    acc_ref[...] += lax.dot_general(x2_ref[0], x1_ref[0], (((1,), (1,)), ((), ())),
                                    precision=precision,
                                    preferred_element_type=jnp.float32)

    @pl.when(k == nk - 1)
    def _():
        o_ref[0] = (acc_ref[...] * r2_ref[0] * r1_ref[0]).astype(o_ref.dtype)


# ------------------------------ wrapper ------------------------------------ #

def pairwise_cosine(x1: jax.Array, x2: jax.Array, *,
                    precision=None, tm=None, tn=None, tk=None) -> jax.Array:
    """Pallas TPU implementation of PairwiseCosine().forward(x1, x2)."""
    if x1.ndim != x2.ndim:
        raise ValueError("x1 and x2 must have the same rank")
    squeeze_batch = x1.ndim == 2
    if squeeze_batch:
        x1, x2 = x1[None], x2[None]
    elif x1.ndim != 3:
        raise ValueError("Unexpected dimension")

    # PyTorch keys eps off x1's dtype: 2e-4 only for float16, else 1e-8.
    eps = 2e-4 if x1.dtype == jnp.float16 else 1e-8
    if x1.dtype != x2.dtype:
        ct = jnp.result_type(x1.dtype, x2.dtype)
        x1, x2 = x1.astype(ct), x2.astype(ct)

    B, S1, D = x1.shape
    B2, S2, D2 = x2.shape
    if B2 != B or D2 != D:
        raise ValueError("x1 and x2 must share batch and feature dims")

    out_dtype = x1.dtype
    in_bytes = jnp.dtype(x1.dtype).itemsize
    out_bytes = jnp.dtype(out_dtype).itemsize
    pack = max(8, 32 // in_bytes)              # sublane packing: 8 f32, 16 bf16/f16
    if precision is None and x1.dtype == jnp.float32:
        # Mosaic's matmul exposes bf16/fp32 contract precision only, so fp32
        # (HIGHEST) is used for f32 inputs; pass precision=lax.Precision.DEFAULT
        # to trade accuracy for fewer MXU passes.
        precision = lax.Precision.HIGHEST

    cfg = _device_config()
    tm, tn, tk, nk, vmem_need = _choose_tiles(B, S1, S2, D, in_bytes, out_bytes,
                                              pack, cfg, tm, tn, tk)

    # Inverse norms hoisted out of the kernel (cheap fused XLA reductions).
    # rsqrt(max(|x|^2, eps^2)) == 1 / max(|x|, eps): matches F.cosine_similarity.
    def inv_norm(x):
        xf = x.astype(jnp.float32)
        return lax.rsqrt(jnp.maximum(jnp.sum(xf * xf, axis=-1), eps * eps))

    r1 = inv_norm(x1)[:, None, :]              # (B, 1, S1): lane-oriented
    r2 = inv_norm(x2)[:, :, None]              # (B, S2, 1): sublane-oriented

    if nk > 1:
        # Zero-pad the contraction dim so no garbage enters partial K tiles.
        Dp = nk * tk
        if Dp != D:
            x1 = jnp.pad(x1, ((0, 0), (0, 0), (0, Dp - D)))
            x2 = jnp.pad(x2, ((0, 0), (0, 0), (0, Dp - D)))

    gi, gj = _cdiv(S2, tm), _cdiv(S1, tn)

    if nk == 1:
        kernel = functools.partial(_cos_kernel, precision=precision)
        grid = (B, gi, gj)
        in_specs = [
            pl.BlockSpec((1, tm, tk), lambda b, i, j: (b, i, 0)),   # x2 rows (held over j)
            pl.BlockSpec((1, tn, tk), lambda b, i, j: (b, j, 0)),   # x1 cols (streamed)
            pl.BlockSpec((1, tm, 1), lambda b, i, j: (b, i, 0)),    # row inv-norms
            pl.BlockSpec((1, 1, tn), lambda b, i, j: (b, 0, j)),    # col inv-norms
        ]
        out_specs = pl.BlockSpec((1, tm, tn), lambda b, i, j: (b, i, j))
        scratch = []
        semantics = ("parallel", "parallel", "parallel")
    else:
        kernel = functools.partial(_cos_kernel_ktiled, precision=precision, nk=nk)
        grid = (B, gi, gj, nk)
        in_specs = [
            pl.BlockSpec((1, tm, tk), lambda b, i, j, k: (b, i, k)),
            pl.BlockSpec((1, tn, tk), lambda b, i, j, k: (b, j, k)),
            pl.BlockSpec((1, tm, 1), lambda b, i, j, k: (b, i, 0)),
            pl.BlockSpec((1, 1, tn), lambda b, i, j, k: (b, 0, j)),
        ]
        out_specs = pl.BlockSpec((1, tm, tn), lambda b, i, j, k: (b, i, j))
        scratch = [pltpu.VMEM((tm, tn), jnp.float32)]
        semantics = ("parallel", "parallel", "parallel", "arbitrary")

    passes = 6 if precision == lax.Precision.HIGHEST else 1
    cost = pl.CostEstimate(
        flops=int(2 * B * S2 * S1 * D * passes + 2 * B * S2 * S1),
        transcendentals=0,
        bytes_accessed=int((B * S2 * D + B * S1 * D * gi) * in_bytes
                           + B * (S1 + S2) * 4 + B * S2 * S1 * out_bytes),
    )
    vmem_limit = int(min(cfg["vmem_cap"], max(2 * vmem_need, 32 << 20)))

    out = pl.pallas_call(
        kernel,
        out_shape=jax.ShapeDtypeStruct((B, S2, S1), out_dtype),
        grid_spec=pltpu.PrefetchScalarGridSpec(
            num_scalar_prefetch=0,
            grid=grid,
            in_specs=in_specs,
            out_specs=out_specs,
            scratch_shapes=scratch,
        ),
        compiler_params=pltpu.CompilerParams(
            dimension_semantics=semantics,
            vmem_limit_bytes=vmem_limit,
        ),
        cost_estimate=cost,
    )(x2, x1, r2, r1)

    return out[0] if squeeze_batch else out


# ------------------------- pure-JAX reference ------------------------------ #

def _ref_pairwise_cosine(x1, x2):
    eps = 2e-4 if x1.dtype == jnp.float16 else 1e-8
    squeeze = x1.ndim == 2
    if squeeze:
        x1, x2 = x1[None], x2[None]
    x1f = x1.astype(jnp.float32)
    x2f = x2.astype(jnp.float32)
    # Exact elementwise contraction (independent of MXU precision choices).
    dot = jnp.sum(x2f[:, :, None, :] * x1f[:, None, :, :], axis=-1)     # (B,S2,S1)
    n1 = jnp.maximum(jnp.sqrt(jnp.sum(x1f * x1f, axis=-1)), eps)        # (B,S1)
    n2 = jnp.maximum(jnp.sqrt(jnp.sum(x2f * x2f, axis=-1)), eps)        # (B,S2)
    out = dot / (n2[:, :, None] * n1[:, None, :])
    return out[0] if squeeze else out


# ------------------------------- main -------------------------------------- #

if __name__ == "__main__":
    keys = jax.random.split(jax.random.PRNGKey(0), 10)
    ok = True

    def run_case(x1, x2, expect_shape, atol, rtol, **kw):
        y = jax.block_until_ready(pairwise_cosine(x1, x2, **kw))
        ref = _ref_pairwise_cosine(x1, x2)
        shape_ok = y.shape == expect_shape
        val_ok = bool(jnp.allclose(y.astype(jnp.float32), ref, atol=atol, rtol=rtol))
        return shape_ok and val_ok

    # 1) 3-D, small, unequal sequence lengths (single ragged tile each way).
    x1 = jax.random.normal(keys[0], (2, 10, 32), dtype=jnp.float32)
    x2 = jax.random.normal(keys[1], (2, 7, 32), dtype=jnp.float32)
    ok &= run_case(x1, x2, (2, 7, 10), 1e-5, 1e-5)

    # 2) 2-D: x1 (N1, D), x2 (N2, D) -> (N2, N1).
    x1 = jax.random.normal(keys[2], (8, 32), dtype=jnp.float32)
    x2 = jax.random.normal(keys[3], (12, 32), dtype=jnp.float32)
    ok &= run_case(x1, x2, (12, 8), 1e-5, 1e-5)

    # 3) Multi-tile with ragged edge tiles: exercises the (b, i, j) grid, x2 row
    #    tile reuse across j, and masked edge stores (no wrapper padding/slice).
    x1 = jax.random.normal(keys[4], (1, 300, 64), dtype=jnp.float32)
    x2 = jax.random.normal(keys[5], (1, 260, 64), dtype=jnp.float32)
    ok &= run_case(x1, x2, (1, 260, 300), 1e-5, 1e-5)

    # 4) bf16 inputs (native bf16 MXU contraction, f32 accumulate + f32 norms).
    x1 = jax.random.normal(keys[6], (2, 9, 32), dtype=jnp.bfloat16)
    x2 = jax.random.normal(keys[7], (2, 13, 32), dtype=jnp.bfloat16)
    ok &= run_case(x1, x2, (2, 13, 9), 3e-2, 3e-2)

    # 5) Forced feature-dim (K) tiling: VMEM accumulator path with nk == 2.
    x1 = jax.random.normal(keys[8], (1, 40, 256), dtype=jnp.float32)
    x2 = jax.random.normal(keys[9], (1, 24, 256), dtype=jnp.float32)
    ok &= run_case(x1, x2, (1, 24, 40), 1e-5, 1e-5, tk=128)

    print("KERNEL_OK" if ok else "KERNEL_MISMATCH")
</pallas_src>

<mosaic_0001>
module attributes {stable_mosaic.version = 11 : i64} {
  func.func @_cos_kernel(%arg0: i32, %arg1: i32, %arg2: i32, %arg3: memref<1x7x32xf32, #tpu.memory_space<vmem>>, %arg4: memref<1x10x32xf32, #tpu.memory_space<vmem>>, %arg5: memref<1x7x1xf32, #tpu.memory_space<vmem>>, %arg6: memref<1x1x10xf32, #tpu.memory_space<vmem>>, %arg7: memref<1x7x10xf32, #tpu.memory_space<vmem>>) attributes {dimension_semantics = [#tpu.dimension_semantics<parallel>, #tpu.dimension_semantics<parallel>, #tpu.dimension_semantics<parallel>], iteration_bounds = array<i64: 2, 1, 1>, scalar_prefetch = 0 : i64, scratch_operands = 0 : i64, tpu.core_type = #tpu.core_type<tc>, window_params = [{transform_indices = @transform_0, window_bounds = array<i64: 1, 7, 32>}, {transform_indices = @transform_1, window_bounds = array<i64: 1, 10, 32>}, {transform_indices = @transform_2, window_bounds = array<i64: 1, 7, 1>}, {transform_indices = @transform_3, window_bounds = array<i64: 1, 1, 10>}, {transform_indices = @transform_4, window_bounds = array<i64: 1, 7, 10>}]} {
    %c0 = arith.constant 0 : index
    %c0_0 = arith.constant 0 : index
    %c0_1 = arith.constant 0 : index
    %0 = vector.load %arg3[%c0, %c0_0, %c0_1] : memref<1x7x32xf32, #tpu.memory_space<vmem>>, vector<1x7x32xf32>
    %1 = vector.shape_cast %0 : vector<1x7x32xf32> to vector<7x32xf32>
    %c0_2 = arith.constant 0 : index
    %c0_3 = arith.constant 0 : index
    %c0_4 = arith.constant 0 : index
    %2 = vector.load %arg4[%c0_2, %c0_3, %c0_4] : memref<1x10x32xf32, #tpu.memory_space<vmem>>, vector<1x10x32xf32>
    %3 = vector.shape_cast %2 : vector<1x10x32xf32> to vector<10x32xf32>
    %cst = arith.constant dense<0.000000e+00> : vector<7x10xf32>
    %4 = tpu.matmul %1, %3, %cst {dimension_numbers = #tpu.dot_dimension_numbers<[1], [1], [0], [0], [0, 0, 1, 0], [], []>, precision = #tpu.contract_precision<fp32>} : vector<7x32xf32>, vector<10x32xf32>, vector<7x10xf32> -> vector<7x10xf32>
    %c0_5 = arith.constant 0 : index
    %c0_6 = arith.constant 0 : index
    %c0_7 = arith.constant 0 : index
    %5 = vector.load %arg5[%c0_5, %c0_6, %c0_7] : memref<1x7x1xf32, #tpu.memory_space<vmem>>, vector<1x7x1xf32>
    %6 = vector.shape_cast %5 : vector<1x7x1xf32> to vector<7x1xf32>
    %7 = vector.broadcast %6 : vector<7x1xf32> to vector<7x10xf32>
    %8 = arith.mulf %4, %7 : vector<7x10xf32>
    %c0_8 = arith.constant 0 : index
    %c0_9 = arith.constant 0 : index
    %c0_10 = arith.constant 0 : index
    %9 = vector.load %arg6[%c0_8, %c0_9, %c0_10] : memref<1x1x10xf32, #tpu.memory_space<vmem>>, vector<1x1x10xf32>
    %10 = vector.shape_cast %9 : vector<1x1x10xf32> to vector<1x10xf32>
    %11 = vector.broadcast %10 : vector<1x10xf32> to vector<7x10xf32>
    %12 = arith.mulf %8, %11 : vector<7x10xf32>
    %c0_11 = arith.constant 0 : index
    %c0_12 = arith.constant 0 : index
    %c0_13 = arith.constant 0 : index
    %13 = vector.load %arg7[%c0_11, %c0_12, %c0_13] : memref<1x7x10xf32, #tpu.memory_space<vmem>>, vector<1x7x10xf32>
    %14 = vector.shape_cast %13 : vector<1x7x10xf32> to vector<7x10xf32>
    %15 = vector.shape_cast %12 : vector<7x10xf32> to vector<1x7x10xf32>
    tpu.vector_store %arg7[%c0_11, %c0_12, %c0_13], %15 {strides = array<i32>} : memref<1x7x10xf32, #tpu.memory_space<vmem>>, vector<1x7x10xf32>,
    return
  }
  func.func @transform_0(%arg0: i32, %arg1: i32, %arg2: i32) -> (i32, i32, i32) {
    %c0_i32 = arith.constant 0 : i32
    %c0_i32_0 = arith.constant 0 : i32
    return %arg0, %arg1, %c0_i32 : i32, i32, i32
  }
  func.func @transform_1(%arg0: i32, %arg1: i32, %arg2: i32) -> (i32, i32, i32) {
    %c0_i32 = arith.constant 0 : i32
    %c0_i32_0 = arith.constant 0 : i32
    return %arg0, %arg2, %c0_i32 : i32, i32, i32
  }
  func.func @transform_2(%arg0: i32, %arg1: i32, %arg2: i32) -> (i32, i32, i32) {
    %c0_i32 = arith.constant 0 : i32
    %c0_i32_0 = arith.constant 0 : i32
    return %arg0, %arg1, %c0_i32 : i32, i32, i32
  }
  func.func @transform_3(%arg0: i32, %arg1: i32, %arg2: i32) -> (i32, i32, i32) {
    %c0_i32 = arith.constant 0 : i32
    %c0_i32_0 = arith.constant 0 : i32
    return %arg0, %c0_i32, %arg2 : i32, i32, i32
  }
  func.func @transform_4(%arg0: i32, %arg1: i32, %arg2: i32) -> (i32, i32, i32) {
    %c0_i32 = arith.constant 0 : i32
    return %arg0, %arg1, %arg2 : i32, i32, i32
  }
}

</mosaic_0001>

<bundles_post_ra>
// kernel: tpu_custom_call.1
= control target key start
LH: loop header
LB: loop body
LE: loop exit
PB: predicated region body
PF: predicated region fallthrough
CT: control target
= control target key end

     0   :  { %s1132_s15 = smov 0   ;;  %s1134_s16 = smov 0   ;;  %s1190_s0 = inlined_call_operand.vmem [shape: f32[2,7,32], index: 0, kind: input, shape index: {}]   ;;  %s1191_s1 = inlined_call_operand.vmem [shape: f32[2,10,32], index: 1, kind: input, shape index: {}]   ;;  %s1192_s2 = inlined_call_operand.vmem [shape: f32[2,7,1], index: 2, kind: input, shape index: {}]   ;;  %s1193_s3 = inlined_call_operand.vmem [shape: f32[2,1,10], index: 3, kind: input, shape index: {}]   ;;  %s1194_s4 = inlined_call_operand.vmem [shape: f32[2,7,10], index: 4, kind: output, shape index: {}]  }
   0x1   :  { %s1136_s17 = smov 0  }
   0x2 LB: > { %s33_s18 = sadd.s32 1, %s1097_s16  ;;  %p953_p0 = scmp.ge.s32.totalorder %s1101_s17, 1  ;;  %s1101_s17 = sphi %s1136_s17, %s14_s17   ;;  %s1097_s16 = sphi %s1134_s16, %s1196_s16   ;;  %s1093_s15 = sphi %s1132_s15, %s1195_s15  }
   0x3   : > { %p35_p1 = scmp.ge.s32.totalorder %s33_s18, 2  ;;  %p233_p2 = scmp.lt.s32.totalorder %s1101_s17, 3 }
   0x5   : > { %s1198_s18 = smov (%p35_p1, %s33_s18), 0  ;;  %p234_p3 = pnand %p953_p0, %p233_p2 }
   0x6   : > { %p288_p4 = scmp.lt.s32.totalorder (!%p234_p3), %s1093_s15, 1  ;;  %v1103_v0 = vmov (!%p234_p3), 0.0|0.0   ;;  %vm1104_vm0 = vmmov (!%p234_p3), 0   ;;  %v1105_v1 = vmov (!%p234_p3), 0.0   ;;  %v1106_v2 = vmov (!%p234_p3), 0  }
   0x7   : > { %237 = sbr.rel (%p234_p3) target bundleno = 265 (0x109), region = 36  ;;  %1023 = vmatprep.subr.bf16.mxu1 (!%p234_p3), %v1103_v0  ;;  %1032 = vmatprep.subr.bf16.mxu0 (!%p234_p3), %v1103_v0  ;;  %vm331_vm1 = vcmask (!%p234_p3), 261120   ;;  %vm815_vm2 = vcmask (!%p234_p3), 79872  }
   0x8   : > { %985 = vmatprep.mubr.msk.f32.mxu1 (!%p234_p3), %vm1104_vm0, %v1105_v1  ;;  %1006 = vmatprep.mubr.msk.f32.mxu0 (!%p234_p3), %vm1104_vm0, %v1105_v1 }
   0x9   : > { %1078 = vset.pattern.permute.xlu0 (!%p234_p3), %v1106_v2 }
   0xe   : > { %s1200_s15 = smov (!%p288_p4, %s1093_s15), 1 }
   0xf   : > { %s962_s19 = sshll.u32 %s1200_s15, 4  ;;  %s1156_s20 = sshll.u32 %s1200_s15, 3 }
  0x10   : > { %s303_s23 = scalar_lea.vmem %s1191_s1, %s962_s19  ;;  %s294_s26 = scalar_lea.vmem %s1190_s0, %s1156_s20 }
  0x11   : > { %v329_v3 = vld [vmem:[%s303_s23] sm:$0xff]  ;;  %v330_v4 = vld [vmem:[%s303_s23 + $0x8] sm:$0x3]  ;;  %s311_s29 = scalar_lea.vmem %s1192_s2, %s1156_s20  ;;  %s317_s6 = scalar_lea.vmem %s1193_s3, %s1200_s15 }
  0x12   : > { %v328_v5 = vld [vmem:[%s294_s26] sm:$0x7f]  ;;  %v336_v6 = vsel %vm331_vm1, %v329_v3, 0  ;;  %v339_v7 = vsel %vm331_vm1, %v330_v4, 0  ;;  %s327_s9 = scalar_lea.vmem %s1194_s4, %s1156_s20 }
  0x13   : > { %v333_v8 = vsel %vm331_vm1, %v328_v5, 0  ;;  %v800_v9 = vld [vmem:[%s311_s29] sm:$0x7f]  ;;  %v342_v10 = vand.u32 4294901760, %v336_v6  ;;  %v345_v11 = vand.u32 4294901760, %v339_v7 }
  0x14   : > { %v408_v12 = vand.u32 4294901760, %v333_v8  ;;  %803 = vperm.xlu0 %1078, %v800_v9   ;;  %v959_v35 = vld [vmem:[%s317_s6] ss:$0 sm:$0xff] }
  0x15   : > { %v1024_v13 = vpack.c.bf16 %v345_v11, %v342_v10  ;;  %v420_v14 = vsub.f32 %v336_v6, %v342_v10  ;;  %v427_v15 = vsub.f32 %v339_v7, %v345_v11 }
  0x16   : > { %v409_v16 = vsub.f32 %v333_v8, %v408_v12 }
  0x17   : > { %1025 = vmatpush3.bf16.xpose.msra.mxu1 %v1024_v13  ;;  %1034 = vmatpush3.bf16.xpose.msra.mxu0 %v1024_v13  ;;  %v421_v18 = vand.u32 4294901760, %v420_v14  ;;  %v428_v19 = vand.u32 4294901760, %v427_v15  ;;  %v1030_v28 = vpack.c.bf16 %v427_v15, %v420_v14 }
  0x18   : > { %v410_v17 = vand.u32 4294901760, %v409_v16  ;;  %1026 = vmatprep.subr.bf16.mxu1 %v1103_v0  ;;  %1035 = vmatprep.subr.bf16.mxu0 %v1103_v0 }
  0x19   : > { %v422_v21 = vsub.f32 %v420_v14, %v421_v18  ;;  %v429_v22 = vsub.f32 %v427_v15, %v428_v19  ;;  %v1036_v26 = vpack.c.bf16 %v428_v19, %v421_v18 }
  0x1a   : > { %v411_v20 = vsub.f32 %v409_v16, %v410_v17 }
  0x1b   : > { %v423_v24 = vand.u32 4294901760, %v422_v21  ;;  %v430_v25 = vand.u32 4294901760, %v429_v22 }
  0x1c   : > { %v412_v23 = vand.u32 4294901760, %v411_v20 }
  0x1d   : > { %v1027_v27 = vpack.c.bf16 %v430_v25, %v423_v24 }
  0x1e   : > { %986 = vmatmul.mubr.f32.vlgmr.msra.gmra.mrb[0].mxu1 %v412_v23  ;;  %1007 = vmatmul.mubr.f32.vlgmr.msra.gmra.mrb[0].mxu0 %v410_v17 }
  0x1f   : > { %1028 = vmatpush3.bf16.xpose.msra.mxu1 %v1027_v27  ;;  %1037 = vmatpush3.bf16.xpose.msra.mxu0 %v1036_v26 }
  0x20   : > { %992 = vmatprep.mubr.msk.f32.mxu1 %vm1104_vm0, %v1105_v1  ;;  %1013 = vmatprep.mubr.msk.f32.mxu0 %vm1104_vm0, %v1105_v1 }
  0x21   : > { %1029 = vmatprep.subr.bf16.mxu1 %v1103_v0  ;;  %1038 = vmatprep.subr.bf16.mxu0 %v1103_v0 }
  0x26   : > { %993 = vmatmul.mubr.f32.vlgmr.msra.gmra.mrb[0].mxu1 %v408_v12  ;;  %1014 = vmatmul.mubr.f32.vlgmr.msra.gmra.mrb[0].mxu0 %v408_v12 }
  0x27   : > { %1031 = vmatpush3.bf16.xpose.msra.mxu1 %v1030_v28  ;;  %1040 = vmatpush3.bf16.xpose.msra.mxu0 %v1024_v13 }
  0x28   : > { %999 = vmatprep.mubr.msk.f32.mxu1 %vm1104_vm0, %v1105_v1  ;;  %1020 = vmatprep.mubr.msk.f32.mxu0 %vm1104_vm0, %v1105_v1 }
  0x2e   : > { %1000 = vmatmul.mubr.f32.vlgmr.msra.gmra.mrb[0].mxu1 %v409_v16  ;;  %1021 = vmatmul.mubr.f32.vlgmr.msra.gmra.mrb[0].mxu0 %v408_v12 }
  0x93   : > { %v804_v29 = vpop.permute.xlu0 %803 }
 0x101   : > { %v571_v30 = vpop.f32.mrb[0].mxu1  ;;  %v796_v31 = vpop.f32.mrb[0].mxu0 }
 0x102   : > { %v1041_v32 = vadd.f32 %v796_v31, %v571_v30  ;;  %v1001_v33 = vpop.f32.mrb[1].mxu1  ;;  %v1022_v34 = vpop.f32.mrb[1].mxu0 }
 0x104   : > { %v806_v36 = vmul.f32 %v1041_v32, %v804_v29 }
 0x106   : > { %v814_v37 = vmul.f32 %v959_v35, %v806_v36 }
 0x108   : > { %816 = vst.msk [vmem:[%s327_s9] sm:$0x7f] %vm815_vm2, %v814_v37 }
 0x109 PF: > { %s14_s17 = sadd.s32 1, %s1101_s17   ;;  %s1195_s15 = smov %s1097_s16 }
 0x10a   : > { %p11_p5 = scmp.ge.s32.totalorder %s14_s17, 4   ;;  %s1196_s16 = smov %s1198_s18 }
 0x10c   :  { %13 = sbr.rel (!%p11_p5) target bundleno = 2 (0x2), region = 75 }

</bundles_post_ra>
